<compile_context>
chip_gen: v7x
topology: tpu7x:2x2x1
jax: 0.10.0
libtpu: 0.0.40
codegen_flags: <defaults>
</compile_context>

<pallas_src>
import jax
import jax.numpy as jnp
from jax import lax
from jax.experimental import pallas as pl
from jax.experimental.pallas import tpu as pltpu


def _round_up(a, b):
    return (a + b - 1) // b * b


def _cdiv(a, b):
    return (a + b - 1) // b


# -------------------- spmm + relu kernel (K-tiled, block-skipping) ----------
def _make_spmm_relu_kernel(*, n_cols, tile_k, gk, mask_k_tail, p_resident,
                           use_acc_scratch):
    """out[i] = relu( sum_j support[i, kidx(i,j)] @ pre_sup[kidx(i,j)] )."""

    def kernel(cnt_ref, kidx_ref, s_ref, p_ref, o_ref, *scratch):
        i = pl.program_id(0)
        j = pl.program_id(1)
        acc = scratch[0] if use_acc_scratch else o_ref

        @pl.when(j == 0)
        def _init():
            acc[...] = jnp.zeros_like(acc)

        @pl.when(j < cnt_ref[i])          # skip all-zero support tiles
        def _accumulate():
            kt = kidx_ref[i * gk + j]      # column-tile actually resident
            s = s_ref[...]
            if mask_k_tail:
                # Zero the ragged K tail (block may extend past column n_cols;
                # out-of-bounds input values are unspecified).
                col = lax.broadcasted_iota(jnp.int32, s.shape, 1) + kt * tile_k
                s = jnp.where(col < n_cols, s, jnp.zeros_like(s))
            if p_resident:
                off = pl.multiple_of(kt * tile_k, tile_k)
                p = p_ref[pl.ds(off, tile_k), :]
            else:
                p = p_ref[...]
            cdt = jnp.promote_types(s.dtype, p.dtype)
            acc[...] += jnp.dot(s.astype(cdt), p.astype(cdt),
                                preferred_element_type=jnp.float32)

        @pl.when(j == pl.num_programs(1) - 1)
        def _finalize():
            o_ref[...] = jnp.maximum(acc[...], 0.0).astype(o_ref.dtype)

    return kernel


# ------------- per-row-tile nonzero column-tile structure (host/XLA) --------
def _block_structure(support, tile_n, tile_k, gi, gk):
    """counts[i] = #nonzero column tiles of row-tile i; kidx packs their
    indices to the front (tail entries repeat the last valid index so the
    pipeline re-uses the already-resident block while pl.when skips compute).
    One extra pass over `support`; amortized when the same graph is reused."""
    n = support.shape[0]
    nz = (support != 0).astype(jnp.int32)
    row_seg = jnp.arange(n, dtype=jnp.int32) // tile_n
    col_seg = jnp.arange(n, dtype=jnp.int32) // tile_k
    t = jax.ops.segment_max(nz, row_seg, num_segments=gi,
                            indices_are_sorted=True)                 # (gi, n)
    bm = jax.ops.segment_max(t.T, col_seg, num_segments=gk,
                             indices_are_sorted=True).T              # (gi, gk)
    counts = jnp.sum(bm, axis=1).astype(jnp.int32)
    order = jnp.argsort(jnp.where(bm > 0, 0, 1), axis=1).astype(jnp.int32)
    jj = jnp.minimum(jnp.arange(gk, dtype=jnp.int32)[None, :],
                     jnp.maximum(counts - 1, 0)[:, None])
    kidx = jnp.take_along_axis(order, jj, axis=1)
    return counts, kidx.reshape(-1).astype(jnp.int32)


# ------------------------------ public wrapper -------------------------------
def graph_convolution(x, w, support, *, tile_n=1024, tile_k=1024,
                      skip_zero_blocks=False,
                      vmem_budget_bytes=40 * 2**20,
                      p_resident_bytes=8 * 2**20):
    """out = relu(support @ (x @ w)) -- GCN layer forward (dense-layer path).

    `support` is streamed in the dtype it is given (store it as bf16 for the
    HBM-bound regime; accumulation is f32 regardless).  With
    `skip_zero_blocks=True`, all-zero (tile_n x tile_k) support tiles are
    skipped via scalar-prefetched tile indices.
    """
    N, D = x.shape
    Dw, F = w.shape
    assert D == Dw and support.shape == (N, N)

    out_dtype = jnp.dtype(x.dtype)
    use_acc_scratch = out_dtype != jnp.dtype(jnp.float32)
    s_bytes = jnp.dtype(support.dtype).itemsize
    F_pad = _round_up(F, 128)             # lane-dense output / full MXU N dim

    # ---- tile selection (generation-safe: fit an explicit VMEM budget) -----
    tile_n = min(tile_n, _round_up(N, 8))
    if _cdiv(N, tile_n) < 2 and N > 8:     # >=2 row blocks so both v7x TCs work
        tile_n = _round_up(_cdiv(N, 2), 8)
    tile_k = min(tile_k, _round_up(N, 128))

    def vmem_need(tn, tk, p_res):
        npc = _round_up(N, tk)
        need = 2 * tn * tk * s_bytes                        # support, dbl-buf
        need += 2 * (npc if p_res else tk) * F_pad * 4      # pre_sup
        need += 2 * tn * F_pad * out_dtype.itemsize         # output, dbl-buf
        need += tn * F_pad * 4 if use_acc_scratch else 0    # accumulator
        return need

    p_resident = _round_up(N, tile_k) * F_pad * 4 <= p_resident_bytes
    while vmem_need(tile_n, tile_k, p_resident) > vmem_budget_bytes:
        if tile_k > 128:
            tile_k = _round_up(tile_k // 2, 128)
        elif tile_n > 8:
            tile_n = _round_up(tile_n // 2, 8)
        elif p_resident:
            p_resident = False
        else:
            break

    gi = _cdiv(N, tile_n)
    gk = _cdiv(N, tile_k)
    Np_r = gi * tile_n
    Np_c = gk * tile_k
    mask_k_tail = (N % tile_k) != 0

    # ---- pre_sup = x @ W : O(N*D*F), negligible next to the N^2 spmm --------
    pre_sup = jnp.dot(x.astype(jnp.float32), w.astype(jnp.float32),
                      preferred_element_type=jnp.float32)
    pre_pad = jnp.zeros((Np_c, F_pad), jnp.float32).at[:N, :F].set(pre_sup)

    # ---- block-sparsity structure (scalar-prefetched) ------------------------
    if skip_zero_blocks:
        counts, kidx = _block_structure(support, tile_n, tile_k, gi, gk)
    else:                                  # dense sweep == degenerate case
        counts = jnp.full((gi,), gk, dtype=jnp.int32)
        kidx = jnp.tile(jnp.arange(gk, dtype=jnp.int32), gi)

    kernel = _make_spmm_relu_kernel(
        n_cols=N, tile_k=tile_k, gk=gk, mask_k_tail=mask_k_tail,
        p_resident=p_resident, use_acc_scratch=use_acc_scratch)

    s_spec = pl.BlockSpec((tile_n, tile_k),
                          lambda i, j, cnt, kix: (i, kix[i * gk + j]))
    if p_resident:
        p_spec = pl.BlockSpec((Np_c, F_pad), lambda i, j, cnt, kix: (0, 0))
    else:
        p_spec = pl.BlockSpec((tile_k, F_pad),
                              lambda i, j, cnt, kix: (kix[i * gk + j], 0))
    o_spec = pl.BlockSpec((tile_n, F_pad), lambda i, j, cnt, kix: (i, 0))

    scratch = ([pltpu.VMEM((tile_n, F_pad), jnp.float32)]
               if use_acc_scratch else [])

    need = vmem_need(tile_n, tile_k, p_resident)
    vmem_limit = int(min(48 * 2**20, max(32 * 2**20, need + need // 2)))

    p_hbm_bytes = (Np_c if p_resident else gi * Np_c) * F_pad * 4
    cost = pl.CostEstimate(
        flops=int(2 * Np_r * Np_c * F_pad),
        transcendentals=0,
        bytes_accessed=int(N * N * s_bytes + p_hbm_bytes
                           + Np_r * F_pad * out_dtype.itemsize))

    out_p = pl.pallas_call(
        kernel,
        out_shape=jax.ShapeDtypeStruct((Np_r, F_pad), out_dtype),
        grid_spec=pltpu.PrefetchScalarGridSpec(
            num_scalar_prefetch=2,
            grid=(gi, gk),
            in_specs=[s_spec, p_spec],
            out_specs=o_spec,
            scratch_shapes=scratch),
        compiler_params=pltpu.CompilerParams(
            dimension_semantics=("parallel", "arbitrary"),
            vmem_limit_bytes=vmem_limit),
        cost_estimate=cost,
    )(counts, kidx, support, pre_pad)

    return out_p[:N, :F]


if __name__ == "__main__":
    key = jax.random.PRNGKey(0)
    kx, kw, ks, kx2, kw2, ks2 = jax.random.split(key, 6)

    # ---- test 1: dense f32 path (shapes consistent with the module) --------
    N, D, F = 128, 64, 32
    x = jax.random.normal(kx, (N, D), dtype=jnp.float32)
    W = jax.random.normal(kw, (D, F), dtype=jnp.float32)       # ~ torch.randn init
    support = jax.random.uniform(ks, (N, N), dtype=jnp.float32) / N
    ref = jnp.maximum(support @ (x @ W), 0.0)

    out = jax.block_until_ready(graph_convolution(x, W, support))
    assert out.shape == (N, F)
    assert jnp.allclose(out, ref, atol=1e-3, rtol=1e-3)

    # ---- test 2: support stored as bf16 (halves the dominant HBM stream) ---
    out_bf16 = jax.block_until_ready(
        graph_convolution(x, W, support.astype(jnp.bfloat16)))
    assert out_bf16.shape == (N, F)
    assert jnp.allclose(out_bf16, ref, atol=5e-2, rtol=5e-2)

    # ---- test 3: ragged N (no padding of support) + zero-block skipping ----
    N2, D2, F2, T = 300, 48, 20, 128
    x2 = jax.random.normal(kx2, (N2, D2), dtype=jnp.float32)
    W2 = jax.random.normal(kw2, (D2, F2), dtype=jnp.float32)
    pattern = jnp.array([[1., 1., 0.], [0., 1., 0.], [1., 0., 1.]])
    keep = jnp.kron(pattern, jnp.ones((T, T)))[:N2, :N2]
    support2 = (jax.random.uniform(ks2, (N2, N2), dtype=jnp.float32) / N2) * keep
    ref2 = jnp.maximum(support2 @ (x2 @ W2), 0.0)

    out2 = jax.block_until_ready(
        graph_convolution(x2, W2, support2, tile_n=T, tile_k=T,
                          skip_zero_blocks=True))
    assert out2.shape == (N2, F2)
    assert jnp.allclose(out2, ref2, atol=1e-3, rtol=1e-3)

    print("KERNEL_OK")
</pallas_src>

<mosaic_0001>
module attributes {stable_mosaic.version = 11 : i64} {
  func.func @kernel(%arg0: i32, %arg1: i32, %arg2: memref<2xi32, #tpu.memory_space<smem>>, %arg3: memref<2xi32, #tpu.memory_space<smem>>, %arg4: memref<64x128xf32, #tpu.memory_space<vmem>>, %arg5: memref<128x128xf32, #tpu.memory_space<vmem>>, %arg6: memref<64x128xf32, #tpu.memory_space<vmem>>) attributes {dimension_semantics = [#tpu.dimension_semantics<parallel>, #tpu.dimension_semantics<arbitrary>], iteration_bounds = array<i64: 2, 1>, scalar_prefetch = 2 : i64, scratch_operands = 0 : i64, tpu.core_type = #tpu.core_type<tc>, window_params = [{transform_indices = @transform_0, window_bounds = array<i64: 64, 128>}, {pipeline_mode = #tpu.pipeline_mode<synchronous>, transform_indices = @transform_1, window_bounds = array<i64: 128, 128>}, {transform_indices = @transform_2, window_bounds = array<i64: 64, 128>}]} {
    %c0_i32 = arith.constant 0 : i32
    %0 = arith.cmpi eq, %arg1, %c0_i32 : i32
    %1 = arith.extui %0 : i1 to i32
    %c0_i32_0 = arith.constant 0 : i32
    %2 = arith.cmpi ne, %1, %c0_i32_0 : i32
    scf.if %2 {
      %cst = arith.constant 0.000000e+00 : f32
      %11 = vector.broadcast %cst : f32 to vector<64x128xf32>
      %c0 = arith.constant 0 : index
      %c0_4 = arith.constant 0 : index
      %12 = vector.load %arg6[%c0, %c0_4] : memref<64x128xf32, #tpu.memory_space<vmem>>, vector<64x128xf32>
      tpu.vector_store %arg6[%c0, %c0_4], %11 {strides = array<i32>} : memref<64x128xf32, #tpu.memory_space<vmem>>, vector<64x128xf32>,
    } else {
    }
    %3 = arith.index_cast %arg0 : i32 to index
    %4 = memref.load %arg2[%3] : memref<2xi32, #tpu.memory_space<smem>>
    %5 = arith.cmpi slt, %arg1, %4 : i32
    %6 = arith.extui %5 : i1 to i32
    %c0_i32_1 = arith.constant 0 : i32
    %7 = arith.cmpi ne, %6, %c0_i32_1 : i32
    scf.if %7 {
      %c1_i32 = arith.constant 1 : i32
      %11 = arith.muli %arg0, %c1_i32 : i32
      %12 = arith.addi %11, %arg1 : i32
      %13 = arith.index_cast %12 : i32 to index
      %14 = memref.load %arg3[%13] : memref<2xi32, #tpu.memory_space<smem>>
      %c0 = arith.constant 0 : index
      %c0_4 = arith.constant 0 : index
      %15 = vector.load %arg4[%c0, %c0_4] : memref<64x128xf32, #tpu.memory_space<vmem>>, vector<64x128xf32>
      %c128_i32 = arith.constant 128 : i32
      %16 = arith.muli %14, %c128_i32 : i32
      %17 = tpu.assume_multiple %16, 128 : i32
      %18 = arith.index_cast %17 : i32 to index
      %c0_5 = arith.constant 0 : index
      %19 = vector.load %arg5[%18, %c0_5] : memref<128x128xf32, #tpu.memory_space<vmem>>, vector<128x128xf32>
      %c0_6 = arith.constant 0 : index
      %c0_7 = arith.constant 0 : index
      %20 = vector.load %arg6[%c0_6, %c0_7] : memref<64x128xf32, #tpu.memory_space<vmem>>, vector<64x128xf32>
      %cst = arith.constant dense<0.000000e+00> : vector<64x128xf32>
      %21 = tpu.matmul %15, %19, %cst {dimension_numbers = #tpu.dot_dimension_numbers<[1], [0], [0], [1], [0, 0, 1, 1], [], []>} : vector<64x128xf32>, vector<128x128xf32>, vector<64x128xf32> -> vector<64x128xf32>
      %22 = arith.addf %20, %21 : vector<64x128xf32>
      %c0_8 = arith.constant 0 : index
      %c0_9 = arith.constant 0 : index
      %23 = vector.load %arg6[%c0_8, %c0_9] : memref<64x128xf32, #tpu.memory_space<vmem>>, vector<64x128xf32>
      tpu.vector_store %arg6[%c0_8, %c0_9], %22 {strides = array<i32>} : memref<64x128xf32, #tpu.memory_space<vmem>>, vector<64x128xf32>,
    } else {
    }
    %c0_i32_2 = arith.constant 0 : i32
    %8 = arith.cmpi eq, %arg1, %c0_i32_2 : i32
    %9 = arith.extui %8 : i1 to i32
    %c0_i32_3 = arith.constant 0 : i32
    %10 = arith.cmpi ne, %9, %c0_i32_3 : i32
    scf.if %10 {
      %c0 = arith.constant 0 : index
      %c0_4 = arith.constant 0 : index
      %11 = vector.load %arg6[%c0, %c0_4] : memref<64x128xf32, #tpu.memory_space<vmem>>, vector<64x128xf32>
      %cst = arith.constant 0.000000e+00 : f32
      %12 = vector.broadcast %cst : f32 to vector<64x128xf32>
      %13 = arith.maximumf %11, %12 : vector<64x128xf32>
      %c0_5 = arith.constant 0 : index
      %c0_6 = arith.constant 0 : index
      %14 = vector.load %arg6[%c0_5, %c0_6] : memref<64x128xf32, #tpu.memory_space<vmem>>, vector<64x128xf32>
      tpu.vector_store %arg6[%c0_5, %c0_6], %13 {strides = array<i32>} : memref<64x128xf32, #tpu.memory_space<vmem>>, vector<64x128xf32>,
    } else {
    }
    return
  }
  func.func @transform_0(%arg0: i32, %arg1: i32, %arg2: memref<2xi32, #tpu.memory_space<smem>>, %arg3: memref<2xi32, #tpu.memory_space<smem>>) -> (i32, i32) {
    %c1_i32 = arith.constant 1 : i32
    %0 = arith.muli %arg0, %c1_i32 : i32
    %1 = arith.addi %0, %arg1 : i32
    %2 = arith.index_cast %1 : i32 to index
    %3 = memref.load %arg3[%2] : memref<2xi32, #tpu.memory_space<smem>>
    %c0_i32 = arith.constant 0 : i32
    return %arg0, %3 : i32, i32
  }
  func.func @transform_1(%arg0: i32, %arg1: i32, %arg2: memref<2xi32, #tpu.memory_space<smem>>, %arg3: memref<2xi32, #tpu.memory_space<smem>>) -> (i32, i32) {
    %c0_i32 = arith.constant 0 : i32
    %c0_i32_0 = arith.constant 0 : i32
    %c0_i32_1 = arith.constant 0 : i32
    return %c0_i32, %c0_i32_0 : i32, i32
  }
  func.func @transform_2(%arg0: i32, %arg1: i32, %arg2: memref<2xi32, #tpu.memory_space<smem>>, %arg3: memref<2xi32, #tpu.memory_space<smem>>) -> (i32, i32) {
    %c0_i32 = arith.constant 0 : i32
    %c0_i32_0 = arith.constant 0 : i32
    return %arg0, %c0_i32 : i32, i32
  }
}

</mosaic_0001>

<bundles_post_ra>
// kernel: tpu_custom_call.1
= control target key start
LH: loop header
LB: loop body
LE: loop exit
PB: predicated region body
PF: predicated region fallthrough
CT: control target
= control target key end

     0   :  { %s1340_s0 = inlined_call_operand.hbm [shape: s32[2], index: 0, kind: input, shape index: {}]   ;;  %s1341_s2 = inlined_call_operand.hbm [shape: f32[128,128], index: 2, kind: input, shape index: {}]   ;;  %s1342_s3 = inlined_call_operand.hbm [shape: f32[128,128], index: 3, kind: input, shape index: {}]   ;;  %s1343_s4 = inlined_call_operand.hbm [shape: f32[128,128], index: 4, kind: output, shape index: {}]   ;;  %s1344_s1 = inlined_call_operand.vmem [shape: s32[2], index: 1, kind: input, shape index: {}]  }
   0x1   :  { %1356 = sst [smem:[#allocation21_spill]] %s1342_s3  ;;  %s767_s17 = scalar_lea.hbm %s1340_s0, 16 }
   0x2   :  { %p768_p0 = scmp.ne.s32.totalorder %s1340_s0, %s767_s17  ;;  %p771_p1 = scmp.lt.u32.totalorder %s767_s17, %s1340_s0 }
   0x4   :  { %p773_p2 = pnand %p771_p1, %p768_p0 }
   0x6   :  { %776 = shalt.err (!%p773_p2)  }
   0x7   :  { %s961_s22 = smov [#allocation3]   ;;  %s11_s27 = sshll.u32 %s1344_s1, 4  ;;  %s12_s27 = int_to_ptr.vmem [resolvable:$true] %s11_s27 }
   0x8   :  { %10 = dma.hbm_to_smem %s1340_s0, 16, %s961_s22, [#allocation2] }
   0x9   :  { %s777_s28 = scalar_lea.vmem %s12_s27, 16  ;;  %p782_p4 = scmp.lt.s32.totalorder %s12_s27, %s12_s27 }
   0xa   :  { %p778_p3 = scmp.ne.s32.totalorder %s12_s27, %s777_s28  ;;  %p783_p5 = scmp.lt.s32.totalorder %s777_s28, %s777_s28 }
   0xc   :  { %p784_p6 = por %p783_p5, %p782_p4 }
   0xe   :  { %p785_p7 = pnand %p784_p6, %p778_p3 }
  0x10   :  { %788 = shalt.err (!%p785_p7)  }
  0x11   :  { %s962_s29 = smov [#allocation4]  }
  0x12   :  { %14 = dma.vmem_to_smem %s12_s27, 16, %s962_s29, [#allocation2] }
  0x13   :  { %911 = dma.done.wait [#allocation2], 32 }
  0x14   :  { %912 = vsyncadd [#allocation2], 4294967264 }
  0x15   :  { %16 = sfence }
  0x16   :  { %17 = vsyncpa [#allocation6], 0 }
  0x17   :  { %19 = vsyncpa [#allocation6 + $0x1], 0 }
  0x18   :  { %20 = vsyncpa [#allocation9], 0 }
  0x19   :  { %21 = vsyncpa [#allocation7], 0 }
  0x1a   :  { %23 = vsyncpa [#allocation7 + $0x1], 0  ;;  %s1011_s0 = smov 0   ;;  %s1013_s1 = smov 0  }
  0x1b   :  { %s1015_s30 = smov 0   ;;  %s1017_s5 = smov 0  }
  0x1c   :  { %s1019_s6 = smov 0   ;;  %s1021_s7 = smov 0  }
  0x1d   :  { %s1023_s8 = smov 0   ;;  %s1025_s9 = smov 0  }
  0x1e   :  { %s1027_s10 = smov 0  }
  0x1f LB: > { %1357 = sst [smem:[#allocation17_spill]] %s935_s30  ;;  %s522_s11 = sadd.s32 4294967295, %s959_s10   ;;  %s959_s10 = sphi %s1027_s10, %s29_s10   ;;  %s955_s9 = sphi %s1025_s9, %s1388_s9   ;;  %s951_s8 = sphi %s1023_s8, %s1387_s8   ;;  %s947_s7 = sphi %s1021_s7, %s1386_s7   ;;  %s943_s6 = sphi %s1019_s6, %s1385_s6   ;;  %s939_s5 = sphi %s1017_s5, %s1384_s5   ;;  %s935_s30 = sphi %s1015_s30, %s1380_s30   ;;  %s931_s1 = sphi %s1013_s1, %s1383_s1   ;;  %s927_s0 = sphi %s1011_s0, %s1382_s0  }
  0x20   : > { %1358 = sst [smem:[#allocation18_spill]] %s959_s10  ;;  %s523_s12 = sadd.s32 4294967294, %s959_s10  }
  0x21   : > { %p67_p8 = scmp.ne.s32.totalorder %s943_s6, %s939_s5  ;;  %p1057_p9 = scmp.eq.s32.totalorder %s522_s11, 0 }
  0x22   : > { %p111_p10 = scmp.ne.s32.totalorder %s935_s30, %s931_s1  ;;  %p112_p12 = scmp.eq.s32.totalorder %s522_s11, 1 }
  0x23   : > { %s1359_s13 = scalar_select %p1057_p9, 1, 0 }
  0x24   : > { %p1065_p11 = por %p1057_p9, %p67_p8  ;;  %p117_p13 = scmp.ne.s32.totalorder %s931_s1, %s927_s0 }
  0x25   : > { %p118_p0 = scmp.eq.s32.totalorder %s523_s12, 1  ;;  %p1071_p1 = por %p112_p12, %p111_p10 }
  0x26   : > { %s1360_s14 = scalar_select %p1065_p11, 1, 0 }
  0x27   : > { %s1361_s15 = scalar_select %p1071_p1, 1, 0 }
  0x28   : > { %p524_p2 = scmp.ge.s32.totalorder %s959_s10, 1  ;;  %p1076_p3 = por %p118_p0, %p117_p13 }
  0x29   : > { %p125_p4 = scmp.lt.s32.totalorder %s959_s10, 3  ;;  %s963_s18 = smov [#allocation8]  }
  0x2a   : > { %s1362_s16 = scalar_select %p1076_p3, 1, 0 }
  0x2b   : > { %p1081_p5 = pnand %p524_p2, %p125_p4  ;;  %s137_s19 = sshll.u32 %s963_s18, 4  ;;  %s138_s19 = int_to_ptr.vmem [resolvable:$true] %s137_s19 }
  0x2c   : > { %s41_s21 = sadd.s32 1, %s955_s9  ;;  %s1365_s3 = sld [smem:[#allocation21_spill]] }
  0x2d   : > { %s1363_s17 = scalar_select %p1081_p5, 1, 0 }
  0x2e   : > { %p669_p6 = pneg %p1081_p5 }
  0x30   : > { %p1090_p8 = pnand %p669_p6, %p1057_p9 }
  0x32   : > { %s789_s24 = scalar_lea.hbm %s1365_s3, 2048  ;;  %p791_p12 = pneg %p1090_p8 }
  0x33   : > { %p790_p10 = scmp.ne.s32.totalorder %s1365_s3, %s789_s24  ;;  %p796_p2 = scmp.lt.u32.totalorder %s789_s24, %s1365_s3 }
  0x35   : > { %p792_p13 = pnand %p791_p12, %p790_p10 }
  0x37   : > { %p793_p0 = pneg %p792_p13 }
  0x39   : > { %p798_p4 = pnand %p796_p2, %p793_p0 }
  0x3b   : > { %801 = shalt.err (!%p798_p4)
}
  0x3c   : > { %s802_s29 = scalar_lea.vmem %s138_s19, 2048  ;;  %p810_p1 = scmp.lt.s32.totalorder %s138_s19, %s138_s19 }
  0x3d   : > { %p803_p6 = scmp.ne.s32.totalorder %s138_s19, %s802_s29  ;;  %p811_p9 = scmp.lt.s32.totalorder %s802_s29, %s802_s29 }
  0x3f   : > { %p805_p7 = pnand %p803_p6, %p791_p12  ;;  %p812_p11 = por %p811_p9, %p810_p1 }
  0x41   : > { %p806_p3 = pneg %p805_p7 }
  0x43   : > { %p813_p5 = pnand %p812_p11, %p806_p3 }
  0x45   : > { %816 = shalt.err (!%p813_p5)
}
  0x46   : > { %s1350_s5 = smov 128   ;;  %s1351_s11 = smov 8  }
  0x47   : > { %672 = dma.hbm_to_vmem [thread:$0]  (!%p1090_p8), %s1365_s3, 2048, %s138_s19, [#allocation9], %s1350_s5, %s1350_s5, %s1351_s11  }
  0x48   : > { %p43_p9 = scmp.ge.s32.totalorder %s41_s21, 2  ;;  %s46_s22 = sld [smem:[#allocation4 + %s955_s9]] }
  0x49   : > { %p61_p11 = scmp.ne.s32.totalorder %s947_s7, %s943_s6  ;;  %s101_s23 = sadd.s32 1, %s935_s30 }
  0x4a   : > { %s1390_s21 = smov (%p43_p9, %s41_s21), 0  ;;  %p62_p1 = scmp.eq.s32.totalorder %s959_s10, 0 }
  0x4b   : > { %1366 = sst [smem:[#allocation19_spill]] %s1390_s21  ;;  %s49_s24 = ssub.s32 %s955_s9, %s1390_s21 }
  0x4c   : > { %s48_s20 = sld [smem:[#allocation4 + %s1390_s21]]  ;;  %p99_p3 = scmp.eq.s32.totalorder %s49_s24, 0 }
  0x4d   : > { %p1124_p5 = por %p62_p1, %p61_p11  ;;  %p684_p7 = scmp.lt.s32.totalorder %s959_s10, 2 }
  0x4e   : > { %s1130_s19 = scalar_select %p99_p3, %s935_s30, %s101_s23  }
  0x4f   : > { %s151_s26 = sand.u32 1, %s947_s7   ;;  %p1135_p8 = pnand %p684_p7, %p1124_p5 }
  0x50   : > { %1368 = sst [smem:[#allocation20_spill]] %s1130_s19  ;;  %s54_s29 = sadd.s32 1, %s947_s7 }
  0x51   : > { %s527_s18 = sshll.u32 %s151_s26, 6  ;;  %s528_s21 = sshll.u32 %s955_s9, 3 }
  0x52   : > { %s50_s28 = ssub.s32 %s46_s22, %s48_s20  ;;  %s155_s19 = scalar_lea.vmem [#allocation5], %s527_s18 }
  0x53   : > { %s51_s12 = sor.u32 %s50_s28, %s49_s24  ;;  %s165_s30 = sshll.u32 %s155_s19, 4  ;;  %s1149_s30 = int_to_ptr.vmem [resolvable:$true] %s165_s30 }
  0x54   : > { %p52_p10 = scmp.eq.s32.totalorder %s51_s12, 0  ;;  %s1156_s25 = scalar_lea.sflag [#allocation6], %s151_s26 }
  0x55   : > { %s661_s5 = scalar_select %p1124_p5, [#allocation4], [#allocation11] }
  0x56   : > { %s1143_s11 = scalar_select %p52_p10, %s947_s7, %s54_s29  }
  0x57   : > { %s662_s23 = scalar_select %p1124_p5, %s955_s9, 0 }
  0x58   : > { %s1392_s5 = smov (!%p684_p7, %s661_s5), [#allocation12]  ;;  %p819_p13 = pneg %p1135_p8 }
  0x59   : > { %s1394_s23 = smov (!%p684_p7, %s662_s23), 0 }
  0x5a   : > { %s157_s3 = sld [smem:[%s1392_s5 + %s1394_s23]] }
  0x60   : > { %s162_s10 = sadd.s32 %s528_s21, %s157_s3  ;;  %s822_s21 = scalar_lea.hbm %s1341_s2, 2048 }
  0x61   : > { %s529_s22 = sshll.u32 %s162_s10, 7 }
  0x62   : > { %s1154_s28 = scalar_lea.hbm %s1341_s2, %s529_s22 }
  0x63   : > { %s817_s29 = scalar_lea.hbm %s1154_s28, 1024  ;;  %p823_p4 = scmp.lt.u32.totalorder %s1154_s28, %s1341_s2 }
  0x64   : > { %p818_p12 = scmp.ne.s32.totalorder %s1154_s28, %s817_s29  ;;  %p824_p6 = scmp.lt.u32.totalorder %s822_s21, %s817_s29 }
  0x65   : > { %p826_p11 = scmp.lt.u32.totalorder %s817_s29, %s1154_s28 }
  0x66   : > { %p820_p0 = pnand %p819_p13, %p818_p12  ;;  %p825_p9 = por %p824_p6, %p823_p4 }
  0x68   : > { %p821_p2 = pneg %p820_p0  ;;  %p827_p1 = por %p826_p11, %p825_p9 }
  0x6a   : > { %p828_p3 = pnand %p827_p1, %p821_p2 }
  0x6c   : > { %831 = shalt.err (!%p828_p3)
}
  0x6d   : > { %s832_s26 = scalar_lea.vmem %s1149_s30, 1024  ;;  %s966_s12 = smov [#allocation5]  }
  0x6e   : > { %p833_p5 = scmp.ne.s32.totalorder %s1149_s30, %s832_s26  ;;  %s837_s18 = sshll.u32 %s966_s12, 4  ;;  %s838_s18 = int_to_ptr.vmem [resolvable:$false] %s837_s18 }
  0x6f   : > { %s839_s23 = scalar_lea.vmem %s838_s18, 2048  ;;  %p840_p12 = scmp.lt.s32.totalorder %s1149_s30, %s838_s18 }
  0x70   : > { %p835_p7 = pnand %p833_p5, %p819_p13  ;;  %p841_p0 = scmp.lt.s32.totalorder %s839_s23, %s832_s26 }
  0x72   : > { %p836_p10 = pneg %p835_p7  ;;  %p842_p4 = por %p841_p0, %p840_p12 }
  0x74   : > { %p843_p6 = pnand %p842_p4, %p836_p10 }
  0x76   : > { %846 = shalt.err (!%p843_p6)
}
  0x77   : > { %s1370_s22 = smov 8   ;;  %s1371_s20 = smov 128  }
  0x78   : > { %678 = dma.hbm_to_vmem [thread:$0]  (!%p1135_p8), %s1154_s28, 1024, %s1149_s30, %s1156_s25, %s1371_s20, %s1371_s20, %s1370_s22  }
  0x79   : > { %p1372_p13 = scmp.ne.s32.totalorder %s1363_s17, 0 }
  0x7a   : > { %s179_s24 = sand.u32 (!%p1372_p13), 1, %s943_s6   ;;  %p1373_p2 = scmp.ne.s32.totalorder (!%p1372_p13), %s1360_s14, 0 }
  0x7b   : > { %177 = sbr.rel (%p1372_p13) target bundleno = 430 (0x1ae), region = 28  ;;  %s531_s29 = sshll.u32 (!%p1372_p13), %s179_s24, 6 }
  0x7c   : > { %s180_s3 = scalar_lea.sflag (!%p1372_p13), [#allocation6], %s179_s24  ;;  %s1190_s10 = scalar_lea.vmem (!%p1372_p13), [#allocation5], %s531_s29 }
  0x82   : > { %914 = dma.done.wait (%p1373_p2), %s180_s3, 1024  }
  0x83   : > { %916 = vsyncadd (%p1373_p2), %s180_s3, 4294966272  ;;  %p1374_p9 = scmp.ne.s32.totalorder %s1359_s13, 0 }
  0x85   : > { %918 = dma.done.wait (%p1374_p9), [#allocation9], 2048  }
  0x86   : > { %920 = vsyncadd (%p1374_p9), [#allocation9], 4294965248  ;;  %s205_s30 = sand.u32 1, %s931_s1   ;;  %s224_s17 = sld [smem:[#allocation3 + %s951_s8]]  ;;  %v967_v0 = vmov 0.0  }
  0x87   : > { %s533_s27 = sshll.u32 %s205_s30, 6 }
  0x88   : > { %s1204_s28 = scalar_lea.vmem [#allocation10], %s533_s27 }
  0x89   : > { %216 = vst [vmem:[%s1204_s28] sm:$0xff] %v967_v0  ;;  %217 = vst [vmem:[%s1204_s28 + $0x8] sm:$0xff] %v967_v0 }
  0x8a   : > { %218 = vst [vmem:[%s1204_s28 + $0x10] sm:$0xff] %v967_v0  ;;  %219 = vst [vmem:[%s1204_s28 + $0x18] sm:$0xff] %v967_v0 }
  0x8b   : > { %220 = vst [vmem:[%s1204_s28 + $0x20] sm:$0xff] %v967_v0  ;;  %221 = vst [vmem:[%s1204_s28 + $0x28] sm:$0xff] %v967_v0 }
  0x8c   : > { %222 = vst [vmem:[%s1204_s28 + $0x30] sm:$0xff] %v967_v0  ;;  %223 = vst [vmem:[%s1204_s28 + $0x38] sm:$0xff] %v967_v0  ;;  %p535_p8 = scmp.le.s32.totalorder %s224_s17, 0 }
  0x8d   : > { %s230_s13 = sld [smem:[#allocation4 + %s951_s8]] (!%p535_p8)  ;;  %v231_v1 = vld [vmem:[%s1190_s10] sm:$0xff] (!%p535_p8)  ;;  %v232_v27 = vld [vmem:[%s1190_s10 + $0x8] sm:$0xff] (!%p535_p8)  ;;  %v233_v29 = vld [vmem:[%s1190_s10 + $0x10] sm:$0xff] (!%p535_p8) }
  0x8e   : > { %228 = sbr.rel (%p535_p8) target bundleno = 404 (0x194), region = 44  ;;  %v235_v2 = vld [vmem:[%s1190_s10 + $0x20] sm:$0xff] (!%p535_p8)  ;;  %599 = vmatprep.mubr.f32.mxu0 (!%p535_p8), %v231_v1  ;;  %v236_v28 = vld [vmem:[%s1190_s10 + $0x28] sm:$0xff] (!%p535_p8)  ;;  %v237_v30 = vld [vmem:[%s1190_s10 + $0x30] sm:$0xff] (!%p535_p8) }
  0x8f   : > { %605 = vmatprep.mubr.f32.mxu1 (!%p535_p8), %v235_v2  ;;  %v234_v31 = vld [vmem:[%s1190_s10 + $0x18] sm:$0xff] (!%p535_p8) }
  0x90   : > { %v238_v32 = vld [vmem:[%s1190_s10 + $0x38] sm:$0xff] (!%p535_p8)  ;;  %v258_v33 = vld [vmem:[%s1204_s28 + $0x8] sm:$0xff] (!%p535_p8)  ;;  %v257_v35 = vld [vmem:[%s1204_s28] sm:$0xff] (!%p535_p8) }
  0x91   : > { %v260_v45 = vld [vmem:[%s1204_s28 + $0x18] sm:$0xff] (!%p535_p8)  ;;  %v259_v47 = vld [vmem:[%s1204_s28 + $0x10] sm:$0xff] (!%p535_p8) }
  0x92   : > { %v262_v34 = vld [vmem:[%s1204_s28 + $0x28] sm:$0xff] (!%p535_p8)  ;;  %v261_v36 = vld [vmem:[%s1204_s28 + $0x20] sm:$0xff] (!%p535_p8) }
  0x93   : > { %s536_s14 = sshll.u32 (!%p535_p8), %s230_s13, 7  ;;  %v264_v46 = vld [vmem:[%s1204_s28 + $0x38] sm:$0xff] (!%p535_p8)  ;;  %v263_v48 = vld [vmem:[%s1204_s28 + $0x30] sm:$0xff] (!%p535_p8) }
  0x94   : > { %s1217_s25 = scalar_lea.vmem (!%p535_p8), [#allocation8], %s536_s14 }
  0x95   : > { %v241_v3 = vld [vmem:[%s1217_s25] sm:$0xff]  ;;  %v242_v4 = vld [vmem:[%s1217_s25 + $0x8] sm:$0xff]  ;;  %v243_v5 = vld [vmem:[%s1217_s25 + $0x10] sm:$0xff] }
  0x96   : > { %v611_v6 = vpack.c.bf16 %v242_v4, %v241_v3  ;;  %v244_v7 = vld [vmem:[%s1217_s25 + $0x18] sm:$0xff]  ;;  %v245_v9 = vld [vmem:[%s1217_s25 + $0x20] sm:$0xff]  ;;  %v246_v10 = vld [vmem:[%s1217_s25 + $0x28] sm:$0xff] }
  0x97   : > { %v615_v8 = vpack.c.bf16 %v244_v7, %v243_v5  ;;  %v619_v11 = vpack.c.bf16 %v246_v10, %v245_v9  ;;  %v247_v12 = vld [vmem:[%s1217_s25 + $0x30] sm:$0xff]  ;;  %v248_v13 = vld [vmem:[%s1217_s25 + $0x38] sm:$0xff]  ;;  %v249_v15 = vld [vmem:[%s1217_s25 + $0x40] sm:$0xff] }
  0x98   : > { %612 = vmatprep.subr.bf16.mxu0 %v611_v6  ;;  %643 = vmatprep.subr.bf16.mxu1 %v611_v6  ;;  %v623_v14 = vpack.c.bf16 %v248_v13, %v247_v12  ;;  %v250_v16 = vld [vmem:[%s1217_s25 + $0x48] sm:$0xff]  ;;  %v251_v18 = vld [vmem:[%s1217_s25 + $0x50] sm:$0xff]  ;;  %v252_v19 = vld [vmem:[%s1217_s25 + $0x58] sm:$0xff] }
  0x99   : > { %614 = vmatpush3.bf16.msra.mxu0 %v611_v6  ;;  %651 = vmatpush3.bf16.msra.mxu1 %v611_v6  ;;  %v627_v17 = vpack.c.bf16 %v250_v16, %v249_v15  ;;  %v631_v20 = vpack.c.bf16 %v252_v19, %v251_v18  ;;  %v253_v21 = vld [vmem:[%s1217_s25 + $0x60] sm:$0xff]  ;;  %v254_v22 = vld [vmem:[%s1217_s25 + $0x68] sm:$0xff]  ;;  %v255_v24 = vld [vmem:[%s1217_s25 + $0x70] sm:$0xff] }
  0x9a   : > { %616 = vmatprep.subr.bf16.mxu0 %v615_v8  ;;  %644 = vmatprep.subr.bf16.mxu1 %v615_v8  ;;  %v635_v23 = vpack.c.bf16 %v254_v22, %v253_v21  ;;  %v256_v25 = vld [vmem:[%s1217_s25 + $0x78] sm:$0xff] }
  0x9b   : > { %v639_v26 = vpack.c.bf16 %v256_v25, %v255_v24 }
  0x9d   : > { %618 = vmatpush3.bf16.msra.mxu0 %v615_v8  ;;  %652 = vmatpush3.bf16.msra.mxu1 %v615_v8 }
  0x9e   : > { %620 = vmatprep.subr.bf16.mxu0 %v619_v11  ;;  %645 = vmatprep.subr.bf16.mxu1 %v619_v11 }
  0xa1   : > { %622 = vmatpush3.bf16.msra.mxu0 %v619_v11  ;;  %653 = vmatpush3.bf16.msra.mxu1 %v619_v11 }
  0xa2   : > { %624 = vmatprep.subr.bf16.mxu0 %v623_v14  ;;  %646 = vmatprep.subr.bf16.mxu1 %v623_v14 }
  0xa5   : > { %626 = vmatpush3.bf16.msra.mxu0 %v623_v14  ;;  %654 = vmatpush3.bf16.msra.mxu1 %v623_v14 }
  0xa6   : > { %628 = vmatprep.subr.bf16.mxu0 %v627_v17  ;;  %647 = vmatprep.subr.bf16.mxu1 %v627_v17 }
  0xa9   : > { %630 = vmatpush3.bf16.msra.mxu0 %v627_v17  ;;  %655 = vmatpush3.bf16.msra.mxu1 %v627_v17 }
  0xaa   : > { %632 = vmatprep.subr.bf16.mxu0 %v631_v20  ;;  %648 = vmatprep.subr.bf16.mxu1 %v631_v20 }
  0xad   : > { %634 = vmatpush3.bf16.msra.mxu0 %v631_v20  ;;  %656 = vmatpush3.bf16.msra.mxu1 %v631_v20 }
  0xae   : > { %636 = vmatprep.subr.bf16.mxu0 %v635_v23  ;;  %649 = vmatprep.subr.bf16.mxu1 %v635_v23 }
  0xb1   : > { %638 = vmatpush3.bf16.msra.mxu0 %v635_v23  ;;  %657 = vmatpush3.bf16.msra.mxu1 %v635_v23 }
  0xb2   : > { %640 = vmatprep.subr.bf16.mxu0 %v639_v26  ;;  %650 = vmatprep.subr.bf16.mxu1 %v639_v26 }
  0xb5   : > { %642 = vmatpush3.bf16.msra.mxu0 %v639_v26  ;;  %658 = vmatpush3.bf16.msra.mxu1 %v639_v26 }
  0xb8   : > { %600 = vmatmul.mubr.f32.vlgmr.msra.gmra.mrb[0].mxu0 %v232_v27  ;;  %606 = vmatmul.mubr.f32.vlgmr.msra.gmra.mrb[0].mxu1 %v236_v28 }
  0xb9   : > { %602 = vmatprep.mubr.f32.mxu0 %v233_v29  ;;  %608 = vmatprep.mubr.f32.mxu1 %v237_v30 }
  0xbc   : > { %603 = vmatmul.mubr.f32.gmra.mrb[2].mxu0 %v234_v31  ;;  %609 = vmatmul.mubr.f32.gmra.mrb[2].mxu1 %v238_v32 }
 0x18b   : > { %v601_v37 = vpop.f32.mrb[0].mxu0  ;;  %v607_v38 = vpop.f32.mrb[0].mxu1 }
 0x18c   : > { %v371_v39 = vadd.f32 %v601_v37, %v258_v33  ;;  %v375_v40 = vadd.f32 %v607_v38, %v262_v34  ;;  %v331_v41 = vpop.f32.mrb[1].mxu0  ;;  %v351_v42 = vpop.f32.mrb[1].mxu1 }
 0x18d   : > { %v370_v43 = vadd.f32 %v331_v41, %v257_v35  ;;  %v374_v44 = vadd.f32 %v351_v42, %v261_v36 }
 0x18e   : > { %379 = vst [vmem:[%s1204_s28 + $0x8] sm:$0xff] %v371_v39  ;;  %383 = vst [vmem:[%s1204_s28 + $0x28] sm:$0xff] %v375_v40 }
 0x18f   : > { %378 = vst [vmem:[%s1204_s28] sm:$0xff] %v370_v43  ;;  %382 = vst [vmem:[%s1204_s28 + $0x20] sm:$0xff] %v374_v44  ;;  %v604_v49 = vpop.f32.mrb[2].mxu0  ;;  %v610_v50 = vpop.f32.mrb[2].mxu1 }
 0x190   : > { %v373_v51 = vadd.f32 %v604_v49, %v260_v45  ;;  %v377_v52 = vadd.f32 %v610_v50, %v264_v46  ;;  %v341_v53 = vpop.f32.mrb[3].mxu0  ;;  %v361_v54 = vpop.f32.mrb[3].mxu1 }
 0x191   : > { %v372_v55 = vadd.f32 %v341_v53, %v259_v47  ;;  %v376_v56 = vadd.f32 %v361_v54, %v263_v48 }
 0x192   : > { %381 = vst [vmem:[%s1204_s28 + $0x18] sm:$0xff] %v373_v51  ;;  %385 = vst [vmem:[%s1204_s28 + $0x38] sm:$0xff] %v377_v52 }
 0x193   : > { %380 = vst [vmem:[%s1204_s28 + $0x10] sm:$0xff] %v372_v55  ;;  %384 = vst [vmem:[%s1204_s28 + $0x30] sm:$0xff] %v376_v56 }
 0x194 PF: > { %s542_s21 = sshll.u32 %s951_s8, 10  ;;  %s427_s26 = sshll.u32 %s1204_s28, 4  ;;  %s1275_s26 = int_to_ptr.vmem [resolvable:$true] %s427_s26 }
 0x195   : > { %v390_v58 = vld [vmem:[%s1204_s28 + $0x8] sm:$0xff]  ;;  %s1269_s19 = scalar_lea.hbm %s1343_s4, %s542_s21  ;;  %s1284_s12 = scalar_lea.sflag [#allocation7], %s205_s30 }
 0x196   : > { %v389_v57 = vld [vmem:[%s1204_s28] sm:$0xff]  ;;  %v398_v61 = vmax.f32 %v390_v58, 0.0  ;;  %v394_v1 = vld [vmem:[%s1204_s28 + $0x28] sm:$0xff]  ;;  %s847_s18 = scalar_lea.vmem %s1275_s26, 1024  ;;  %p1375_p1 = scmp.ne.s32.totalorder %s1361_s15, 0 }
 0x197   : > { %v397_v60 = vmax.f32 %v389_v57, 0.0  ;;  %v393_v0 = vld [vmem:[%s1204_s28 + $0x20] sm:$0xff]  ;;  %v402_v4 = vmax.f32 %v394_v1, 0.0  ;;  %p848_p11 = scmp.ne.s32.totalorder %s1275_s26, %s847_s18  ;;  %s968_s23 = smov [#allocation10]  }
 0x198   : > { %v401_v3 = vmax.f32 %v393_v0, 0.0  ;;  %406 = vst [vmem:[%s1204_s28 + $0x8] sm:$0xff] %v398_v61  ;;  %s851_s22 = sshll.u32 %s968_s23, 4  ;;  %s852_s22 = int_to_ptr.vmem [resolvable:$false] %s851_s22 }
 0x199   : > { %v392_v63 = vld [vmem:[%s1204_s28 + $0x18] sm:$0xff]  ;;  %405 = vst [vmem:[%s1204_s28] sm:$0xff] %v397_v60  ;;  %410 = vst [vmem:[%s1204_s28 + $0x28] sm:$0xff] %v402_v4  ;;  %p849_p3 = pnand %p848_p11, %p1375_p1  ;;  %s853_s20 = scalar_lea.vmem %s852_s22, 2048 }
 0x19a   : > { %v391_v59 = vld [vmem:[%s1204_s28 + $0x10] sm:$0xff]  ;;  %v400_v2 = vmax.f32 %v392_v63, 0.0  ;;  %v396_v6 = vld [vmem:[%s1204_s28 + $0x38] sm:$0xff]  ;;  %409 = vst [vmem:[%s1204_s28 + $0x20] sm:$0xff] %v401_v3  ;;  %p854_p7 = scmp.lt.s32.totalorder %s1275_s26, %s852_s22  ;;  %p855_p10 = scmp.lt.s32.totalorder %s853_s20, %s847_s18 }
 0x19b   : > { %v399_v62 = vmax.f32 %v391_v59, 0.0  ;;  %v395_v5 = vld [vmem:[%s1204_s28 + $0x30] sm:$0xff]  ;;  %v404_v8 = vmax.f32 %v396_v6, 0.0  ;;  %p850_p5 = pneg %p849_p3 }
 0x19c   : > { %v403_v7 = vmax.f32 %v395_v5, 0.0  ;;  %408 = vst [vmem:[%s1204_s28 + $0x18] sm:$0xff] %v400_v2  ;;  %p856_p12 = por %p855_p10, %p854_p7 }
 0x19d   : > { %407 = vst [vmem:[%s1204_s28 + $0x10] sm:$0xff] %v399_v62  ;;  %412 = vst [vmem:[%s1204_s28 + $0x38] sm:$0xff] %v404_v8 }
 0x19e   : > { %411 = vst [vmem:[%s1204_s28 + $0x30] sm:$0xff] %v403_v7  ;;  %p857_p0 = pnand %p856_p12, %p850_p5 }
 0x1a0   : > { %860 = shalt.err (!%p857_p0)
}
 0x1a1   : > { %s861_s24 = scalar_lea.hbm %s1269_s19, 1024  ;;  %s865_s10 = scalar_lea.hbm %s1343_s4, 2048 }
 0x1a2   : > { %p862_p4 = scmp.ne.s32.totalorder %s1269_s19, %s861_s24  ;;  %p866_p2 = scmp.lt.u32.totalorder %s1269_s19, %s1343_s4 }
 0x1a3   : > { %p867_p9 = scmp.lt.u32.totalorder %s865_s10, %s861_s24  ;;  %p869_p11 = scmp.lt.u32.totalorder %s861_s24, %s1269_s19 }
 0x1a4   : > { %p863_p6 = pnand %p862_p4, %p1375_p1 }
 0x1a5   : > { %p868_p8 = por %p867_p9, %p866_p2 }
 0x1a6   : > { %p864_p13 = pneg %p863_p6 }
 0x1a7   : > { %p870_p3 = por %p869_p11, %p868_p8 }
 0x1a9   : > { %p871_p5 = pnand %p870_p3, %p864_p13 }
 0x1ab   : > { %874 = shalt.err (!%p871_p5)
}
 0x1ac   : > { %s969_s27 = smov 128   ;;  %s970_s28 = smov 8  }
 0x1ad   : > { %667 = dma.vmem_to_hbm [thread:$0]  (%p1375_p1), %s1275_s26, 1024, %s1269_s19, %s1284_s12, %s969_s27, %s969_s27, %s970_s28  }
 0x1ae PF: > { %s1376_s13 = sld [smem:[#allocation18_spill]]  ;;  %s442_s14 = sand.u32 1, %s927_s0  }
 0x1af   : > { %p1377_p7 = scmp.ne.s32.totalorder %s1362_s16, 0  ;;  %s443_s25 = scalar_lea.sflag [#allocation7], %s442_s14 }
 0x1b4   : > { %p1378_p10 = scmp.ge.s32.totalorder %s1376_s13, 2 }
 0x1b6   : > { %p680_p12 = pnand %p1378_p10, %p1377_p7 }
 0x1b8   : > { %922 = dma.done.wait (!%p680_p12), %s443_s25, 1024  }
 0x1b9   : > { %924 = vsyncadd (!%p680_p12), %s443_s25, 4294966272  ;;  %s29_s10 = sadd.s32 1, %s1376_s13   ;;  %s1379_s21 = sld [smem:[#allocation17_spill]] }
 0x1ba   : > { %p26_p0 = scmp.ge.s32.totalorder %s29_s10, 4   ;;  %s1380_s30 = sld [smem:[#allocation20_spill]] }
 0x1bb   : > { %s1381_s15 = sld [smem:[#allocation19_spill]]  ;;  %s1382_s0 = smov %s931_s1 }
 0x1bc   : > { %s1384_s5 = smov %s943_s6  ;;  %s1385_s6 = smov %s947_s7 }
 0x1bd   : > { %s1386_s7 = smov %s1143_s11  ;;  %s1387_s8 = smov %s955_s9 }
 0x1be   :  { %28 = sbr.rel (!%p26_p0) target bundleno = 31 (0x1f), region = 90 }
 0x1bf   : > { %s1383_s1 = smov %s1379_s21 }
 0x1c1   : > { %s1388_s9 = smov %s1381_s15 }
 0x1c5   :  { %448 = vsyncpa [#allocation6], 1 }
 0x1c6   :  { %450 = vsyncpa [#allocation6 + $0x1], 1 }
 0x1c7   :  { %451 = vsyncpa [#allocation9], 1 }
 0x1c8   :  { %452 = vsyncpa [#allocation7], 1 }
 0x1c9   :  { %454 = vsyncpa [#allocation7 + $0x1], 1 }

</bundles_post_ra>
